<compile_context>
chip_gen: v7x
topology: tpu7x:2x2x1
jax: 0.10.0
libtpu: 0.0.40
codegen_flags: <defaults>
</compile_context>

<pallas_src>
import jax
import jax.numpy as jnp
from jax.experimental import pallas as pl
from jax.experimental.pallas import tpu as pltpu

EPS = 1e-5


# ----------------------------------------------------------------------------
# Fused kernel: residual add + LayerNorm + Linear mixer (residual provided)
# ----------------------------------------------------------------------------
def fused_block_kernel(h_ref, r_ref, nw_ref, nb_ref, mw_ref, mb_ref,
                       y_ref, res_ref):
    h = h_ref[...].astype(jnp.float32)
    r = r_ref[...].astype(jnp.float32)
    res = r + h                                   # residual = residual + drop_path(h)
    res_ref[...] = res.astype(res_ref.dtype)      # store early (spread vst pressure)

    mean = jnp.mean(res, axis=-1, keepdims=True)
    cent = res - mean
    var = jnp.mean(cent * cent, axis=-1, keepdims=True)
    norm = cent * jax.lax.rsqrt(var + EPS)        # rsqrt -> EUP slot (free-ish)
    normed = norm * nw_ref[...].astype(jnp.float32) + nb_ref[...].astype(jnp.float32)

    acc = jnp.dot(normed, mw_ref[...].astype(jnp.float32),
                  preferred_element_type=jnp.float32)
    y_ref[...] = (acc + mb_ref[...].astype(jnp.float32)).astype(y_ref.dtype)


# ----------------------------------------------------------------------------
# Fused kernel: residual is None (first block) -> no residual input DMA at all
# ----------------------------------------------------------------------------
def fused_block_kernel_nores(h_ref, nw_ref, nb_ref, mw_ref, mb_ref,
                             y_ref, res_ref):
    res = h_ref[...].astype(jnp.float32)          # residual = hidden_states
    res_ref[...] = res.astype(res_ref.dtype)

    mean = jnp.mean(res, axis=-1, keepdims=True)
    cent = res - mean
    var = jnp.mean(cent * cent, axis=-1, keepdims=True)
    norm = cent * jax.lax.rsqrt(var + EPS)
    normed = norm * nw_ref[...].astype(jnp.float32) + nb_ref[...].astype(jnp.float32)

    acc = jnp.dot(normed, mw_ref[...].astype(jnp.float32),
                  preferred_element_type=jnp.float32)
    y_ref[...] = (acc + mb_ref[...].astype(jnp.float32)).astype(y_ref.dtype)


# ----------------------------------------------------------------------------
# Row-tile selection: biggest tile <= desired that evenly divides n_rows
# (n_rows is already padded to a multiple of 8), keeping a grid of >= 2 when
# the whole problem would otherwise fit in one block (v7x has 2 TensorCores
# sharing the "parallel" grid axis).
# ----------------------------------------------------------------------------
def _pick_row_tile(n_rows, desired):
    if n_rows <= desired:
        half = n_rows // 2
        if half >= 8 and half % 8 == 0 and n_rows % half == 0:
            return half
        return n_rows
    t = (desired // 8) * 8
    while t >= 8:
        if n_rows % t == 0:
            return t
        t -= 8
    return n_rows


# ----------------------------------------------------------------------------
# Wrapper
# ----------------------------------------------------------------------------
def block_forward(hidden_states, residual, norm_w, norm_b, mix_w, mix_b,
                  *, residual_in_fp32=True, row_tile=512):
    B, L, D = hidden_states.shape
    N = B * L

    h2 = hidden_states.reshape(N, D)
    r2 = None if residual is None else residual.reshape(N, D)

    # Pad rows to a multiple of 8 (sublane granularity) so tiling / megacore
    # sharding works for ragged B*L; padded rows are sliced off afterwards
    # (LayerNorm is row-wise, so padding cannot contaminate real rows).
    N_pad = ((N + 7) // 8) * 8
    if N_pad != N:
        pad = N_pad - N
        h2 = jnp.pad(h2, ((0, pad), (0, 0)))
        if r2 is not None:
            r2 = jnp.pad(r2, ((0, pad), (0, 0)))

    tile = _pick_row_tile(N_pad, row_tile)
    grid = (N_pad // tile,)

    res_dtype = jnp.float32 if residual_in_fp32 else hidden_states.dtype

    row_spec = pl.BlockSpec((tile, D), lambda i: (i, 0))
    vec_spec = pl.BlockSpec((1, D), lambda i: (0, 0))     # LN / bias params
    mat_spec = pl.BlockSpec((D, D), lambda i: (0, 0))     # mixer weight (stays resident)

    out_shapes = (jax.ShapeDtypeStruct((N_pad, D), hidden_states.dtype),
                  jax.ShapeDtypeStruct((N_pad, D), res_dtype))
    out_specs = [row_spec, row_spec]

    cparams = pltpu.CompilerParams(dimension_semantics=("parallel",))

    # Advisory cost hint for XLA's scheduler around the custom call.
    in_bytes = h2.size * h2.dtype.itemsize
    if r2 is not None:
        in_bytes += r2.size * r2.dtype.itemsize
    in_bytes += (norm_w.size + norm_b.size + mix_b.size) * 4 + mix_w.size * mix_w.dtype.itemsize
    out_bytes = N_pad * D * (hidden_states.dtype.itemsize + jnp.dtype(res_dtype).itemsize)
    cost = pl.CostEstimate(flops=2 * N_pad * D * D + 10 * N_pad * D,
                           transcendentals=N_pad,
                           bytes_accessed=in_bytes + out_bytes)

    if residual is None:
        mixed, new_res = pl.pallas_call(
            fused_block_kernel_nores,
            out_shape=out_shapes,
            grid_spec=pltpu.PrefetchScalarGridSpec(
                num_scalar_prefetch=0,
                grid=grid,
                in_specs=[row_spec, vec_spec, vec_spec, mat_spec, vec_spec],
                out_specs=out_specs),
            compiler_params=cparams,
            cost_estimate=cost,
        )(h2, norm_w.reshape(1, D), norm_b.reshape(1, D),
          mix_w, mix_b.reshape(1, D))
    else:
        mixed, new_res = pl.pallas_call(
            fused_block_kernel,
            out_shape=out_shapes,
            grid_spec=pltpu.PrefetchScalarGridSpec(
                num_scalar_prefetch=0,
                grid=grid,
                in_specs=[row_spec, row_spec, vec_spec, vec_spec, mat_spec,
                          vec_spec],
                out_specs=out_specs),
            compiler_params=cparams,
            cost_estimate=cost,
        )(h2, r2, norm_w.reshape(1, D), norm_b.reshape(1, D),
          mix_w, mix_b.reshape(1, D))

    mixed = mixed[:N].reshape(B, L, D)
    new_res = new_res[:N].reshape(B, L, D)
    return mixed, new_res


# ----------------------------------------------------------------------------
# Pure-JAX reference (for correctness check)
# ----------------------------------------------------------------------------
def block_forward_ref(hidden_states, residual, norm_w, norm_b, mix_w, mix_b,
                      *, residual_in_fp32=True):
    if residual is None:
        res = hidden_states.astype(jnp.float32)
    else:
        res = residual.astype(jnp.float32) + hidden_states.astype(jnp.float32)
    mean = jnp.mean(res, axis=-1, keepdims=True)
    var = jnp.mean((res - mean) ** 2, axis=-1, keepdims=True)
    normed = (res - mean) * jax.lax.rsqrt(var + EPS) * norm_w + norm_b
    mixed = normed @ mix_w + mix_b
    res_out = res if residual_in_fp32 else res.astype(hidden_states.dtype)
    return mixed.astype(hidden_states.dtype), res_out


if __name__ == "__main__":
    D = 128
    key = jax.random.PRNGKey(0)
    k1, k2, k3, k4, k5, k6, k7, k8 = jax.random.split(key, 8)

    # Deterministic parameter init (LayerNorm: w ~ near 1, b ~ near 0; Linear mixer)
    norm_w = 1.0 + 0.01 * jax.random.normal(k3, (D,), dtype=jnp.float32)
    norm_b = 0.01 * jax.random.normal(k4, (D,), dtype=jnp.float32)
    mix_w = jax.random.normal(k5, (D, D), dtype=jnp.float32) / jnp.sqrt(D)
    mix_b = 0.01 * jax.random.normal(k6, (D,), dtype=jnp.float32)

    # --- Case 1 & 2: aligned shapes, with and without residual -------------
    B, L = 2, 8
    hidden = jax.random.normal(k1, (B, L, D), dtype=jnp.float32)
    resid = jax.random.normal(k2, (B, L, D), dtype=jnp.float32)

    ref_h, ref_r = block_forward_ref(hidden, resid, norm_w, norm_b, mix_w, mix_b)
    ref_h0, ref_r0 = block_forward_ref(hidden, None, norm_w, norm_b, mix_w, mix_b)

    out_h, out_r = block_forward(hidden, resid, norm_w, norm_b, mix_w, mix_b)
    out_h = jax.block_until_ready(out_h)
    out_r = jax.block_until_ready(out_r)

    out_h0, out_r0 = block_forward(hidden, None, norm_w, norm_b, mix_w, mix_b)
    out_h0 = jax.block_until_ready(out_h0)
    out_r0 = jax.block_until_ready(out_r0)

    assert jnp.allclose(out_h, ref_h, atol=1e-4, rtol=1e-4)
    assert jnp.allclose(out_r, ref_r, atol=1e-5, rtol=1e-5)
    assert jnp.allclose(out_h0, ref_h0, atol=1e-4, rtol=1e-4)
    assert jnp.allclose(out_r0, ref_r0, atol=1e-5, rtol=1e-5)

    # --- Case 3: ragged row count (B*L not a multiple of 8) -----------------
    Br, Lr = 2, 7
    hidden_r = jax.random.normal(k7, (Br, Lr, D), dtype=jnp.float32)
    resid_r = jax.random.normal(k8, (Br, Lr, D), dtype=jnp.float32)

    ref_hr, ref_rr = block_forward_ref(hidden_r, resid_r, norm_w, norm_b, mix_w, mix_b)
    out_hr, out_rr = block_forward(hidden_r, resid_r, norm_w, norm_b, mix_w, mix_b)
    out_hr = jax.block_until_ready(out_hr)
    out_rr = jax.block_until_ready(out_rr)

    assert jnp.allclose(out_hr, ref_hr, atol=1e-4, rtol=1e-4)
    assert jnp.allclose(out_rr, ref_rr, atol=1e-5, rtol=1e-5)

    print("KERNEL_OK")
</pallas_src>

<mosaic_0001>
module attributes {stable_mosaic.version = 11 : i64} {
  func.func @fused_block_kernel(%arg0: i32, %arg1: memref<8x128xf32, #tpu.memory_space<vmem>>, %arg2: memref<8x128xf32, #tpu.memory_space<vmem>>, %arg3: memref<1x128xf32, #tpu.memory_space<vmem>>, %arg4: memref<1x128xf32, #tpu.memory_space<vmem>>, %arg5: memref<128x128xf32, #tpu.memory_space<vmem>>, %arg6: memref<1x128xf32, #tpu.memory_space<vmem>>, %arg7: memref<8x128xf32, #tpu.memory_space<vmem>>, %arg8: memref<8x128xf32, #tpu.memory_space<vmem>>) attributes {dimension_semantics = [#tpu.dimension_semantics<parallel>], iteration_bounds = array<i64: 2>, scalar_prefetch = 0 : i64, scratch_operands = 0 : i64, tpu.core_type = #tpu.core_type<tc>, window_params = [{transform_indices = @transform_0, window_bounds = array<i64: 8, 128>}, {transform_indices = @transform_1, window_bounds = array<i64: 8, 128>}, {pipeline_mode = #tpu.pipeline_mode<synchronous>, transform_indices = @transform_2, window_bounds = array<i64: 1, 128>}, {pipeline_mode = #tpu.pipeline_mode<synchronous>, transform_indices = @transform_3, window_bounds = array<i64: 1, 128>}, {pipeline_mode = #tpu.pipeline_mode<synchronous>, transform_indices = @transform_4, window_bounds = array<i64: 128, 128>}, {pipeline_mode = #tpu.pipeline_mode<synchronous>, transform_indices = @transform_5, window_bounds = array<i64: 1, 128>}, {transform_indices = @transform_6, window_bounds = array<i64: 8, 128>}, {transform_indices = @transform_7, window_bounds = array<i64: 8, 128>}]} {
    %c0 = arith.constant 0 : index
    %c0_0 = arith.constant 0 : index
    %0 = vector.load %arg1[%c0, %c0_0] : memref<8x128xf32, #tpu.memory_space<vmem>>, vector<8x128xf32>
    %c0_1 = arith.constant 0 : index
    %c0_2 = arith.constant 0 : index
    %1 = vector.load %arg2[%c0_1, %c0_2] : memref<8x128xf32, #tpu.memory_space<vmem>>, vector<8x128xf32>
    %2 = arith.addf %1, %0 : vector<8x128xf32>
    %c0_3 = arith.constant 0 : index
    %c0_4 = arith.constant 0 : index
    %3 = vector.load %arg8[%c0_3, %c0_4] : memref<8x128xf32, #tpu.memory_space<vmem>>, vector<8x128xf32>
    tpu.vector_store %arg8[%c0_3, %c0_4], %2 {strides = array<i32>} : memref<8x128xf32, #tpu.memory_space<vmem>>, vector<8x128xf32>,
    %cst = arith.constant dense<0.000000e+00> : vector<8xf32>
    %4 = vector.multi_reduction <add>, %2, %cst [1] : vector<8x128xf32> to vector<8xf32>
    %5 = vector.shape_cast %4 : vector<8xf32> to vector<8x1xf32>
    %cst_5 = arith.constant 1.280000e+02 : f32
    %6 = vector.broadcast %cst_5 : f32 to vector<8x1xf32>
    %7 = arith.divf %5, %6 : vector<8x1xf32>
    %8 = vector.broadcast %7 : vector<8x1xf32> to vector<8x128xf32>
    %9 = arith.subf %2, %8 : vector<8x128xf32>
    %10 = arith.mulf %9, %9 : vector<8x128xf32>
    %cst_6 = arith.constant dense<0.000000e+00> : vector<8xf32>
    %11 = vector.multi_reduction <add>, %10, %cst_6 [1] : vector<8x128xf32> to vector<8xf32>
    %12 = vector.shape_cast %11 : vector<8xf32> to vector<8x1xf32>
    %cst_7 = arith.constant 1.280000e+02 : f32
    %13 = vector.broadcast %cst_7 : f32 to vector<8x1xf32>
    %14 = arith.divf %12, %13 : vector<8x1xf32>
    %cst_8 = arith.constant 9.99999974E-6 : f32
    %15 = vector.broadcast %cst_8 : f32 to vector<8x1xf32>
    %16 = arith.addf %14, %15 : vector<8x1xf32>
    %17 = math.rsqrt %16 : vector<8x1xf32>
    %18 = vector.broadcast %17 : vector<8x1xf32> to vector<8x128xf32>
    %19 = arith.mulf %9, %18 : vector<8x128xf32>
    %c0_9 = arith.constant 0 : index
    %c0_10 = arith.constant 0 : index
    %20 = vector.load %arg3[%c0_9, %c0_10] : memref<1x128xf32, #tpu.memory_space<vmem>>, vector<1x128xf32>
    %21 = vector.broadcast %20 : vector<1x128xf32> to vector<8x128xf32>
    %22 = arith.mulf %19, %21 : vector<8x128xf32>
    %c0_11 = arith.constant 0 : index
    %c0_12 = arith.constant 0 : index
    %23 = vector.load %arg4[%c0_11, %c0_12] : memref<1x128xf32, #tpu.memory_space<vmem>>, vector<1x128xf32>
    %24 = vector.broadcast %23 : vector<1x128xf32> to vector<8x128xf32>
    %25 = arith.addf %22, %24 : vector<8x128xf32>
    %c0_13 = arith.constant 0 : index
    %c0_14 = arith.constant 0 : index
    %26 = vector.load %arg5[%c0_13, %c0_14] : memref<128x128xf32, #tpu.memory_space<vmem>>, vector<128x128xf32>
    %cst_15 = arith.constant dense<0.000000e+00> : vector<8x128xf32>
    %27 = tpu.matmul %25, %26, %cst_15 {dimension_numbers = #tpu.dot_dimension_numbers<[1], [0], [0], [1], [0, 0, 1, 1], [], []>} : vector<8x128xf32>, vector<128x128xf32>, vector<8x128xf32> -> vector<8x128xf32>
    %c0_16 = arith.constant 0 : index
    %c0_17 = arith.constant 0 : index
    %28 = vector.load %arg6[%c0_16, %c0_17] : memref<1x128xf32, #tpu.memory_space<vmem>>, vector<1x128xf32>
    %29 = vector.broadcast %28 : vector<1x128xf32> to vector<8x128xf32>
    %30 = arith.addf %27, %29 : vector<8x128xf32>
    %c0_18 = arith.constant 0 : index
    %c0_19 = arith.constant 0 : index
    %31 = vector.load %arg7[%c0_18, %c0_19] : memref<8x128xf32, #tpu.memory_space<vmem>>, vector<8x128xf32>
    tpu.vector_store %arg7[%c0_18, %c0_19], %30 {strides = array<i32>} : memref<8x128xf32, #tpu.memory_space<vmem>>, vector<8x128xf32>,
    return
  }
  func.func @transform_0(%arg0: i32) -> (i32, i32) {
    %c0_i32 = arith.constant 0 : i32
    %c0_i32_0 = arith.constant 0 : i32
    return %arg0, %c0_i32 : i32, i32
  }
  func.func @transform_1(%arg0: i32) -> (i32, i32) {
    %c0_i32 = arith.constant 0 : i32
    %c0_i32_0 = arith.constant 0 : i32
    return %arg0, %c0_i32 : i32, i32
  }
  func.func @transform_2(%arg0: i32) -> (i32, i32) {
    %c0_i32 = arith.constant 0 : i32
    %c0_i32_0 = arith.constant 0 : i32
    %c0_i32_1 = arith.constant 0 : i32
    return %c0_i32, %c0_i32_0 : i32, i32
  }
  func.func @transform_3(%arg0: i32) -> (i32, i32) {
    %c0_i32 = arith.constant 0 : i32
    %c0_i32_0 = arith.constant 0 : i32
    %c0_i32_1 = arith.constant 0 : i32
    return %c0_i32, %c0_i32_0 : i32, i32
  }
  func.func @transform_4(%arg0: i32) -> (i32, i32) {
    %c0_i32 = arith.constant 0 : i32
    %c0_i32_0 = arith.constant 0 : i32
    %c0_i32_1 = arith.constant 0 : i32
    return %c0_i32, %c0_i32_0 : i32, i32
  }
  func.func @transform_5(%arg0: i32) -> (i32, i32) {
    %c0_i32 = arith.constant 0 : i32
    %c0_i32_0 = arith.constant 0 : i32
    %c0_i32_1 = arith.constant 0 : i32
    return %c0_i32, %c0_i32_0 : i32, i32
  }
  func.func @transform_6(%arg0: i32) -> (i32, i32) {
    %c0_i32 = arith.constant 0 : i32
    %c0_i32_0 = arith.constant 0 : i32
    return %arg0, %c0_i32 : i32, i32
  }
  func.func @transform_7(%arg0: i32) -> (i32, i32) {
    %c0_i32 = arith.constant 0 : i32
    %c0_i32_0 = arith.constant 0 : i32
    return %arg0, %c0_i32 : i32, i32
  }
}

</mosaic_0001>

<bundles_post_ra>
// kernel: tpu_custom_call.1
= control target key start
LH: loop header
LB: loop body
LE: loop exit
PB: predicated region body
PF: predicated region fallthrough
CT: control target
= control target key end

     0   :  { %s1344_s0 = inlined_call_operand.hbm [shape: f32[16,128], index: 0, kind: input, shape index: {}]   ;;  %s1345_s1 = inlined_call_operand.hbm [shape: f32[16,128], index: 1, kind: input, shape index: {}]   ;;  %s1346_s2 = inlined_call_operand.vmem [shape: f32[1,128], index: 2, kind: input, shape index: {}]   ;;  %s1347_s3 = inlined_call_operand.vmem [shape: f32[1,128], index: 3, kind: input, shape index: {}]   ;;  %s1348_s4 = inlined_call_operand.hbm [shape: f32[128,128], index: 4, kind: input, shape index: {}]   ;;  %s1349_s5 = inlined_call_operand.vmem [shape: f32[1,128], index: 5, kind: input, shape index: {}]   ;;  %s1350_s6 = inlined_call_operand.hbm [shape: f32[16,128], index: 6, kind: output, shape index: {0}]   ;;  %s1351_s7 = inlined_call_operand.hbm [shape: f32[16,128], index: 7, kind: output, shape index: {1}]  }
   0x1   :  { %1359 = sst [smem:[#allocation19_spill]] %s1348_s4 }
   0x2   :  { %13 = vsyncpa [#allocation3], 0 }
   0x3   :  { %15 = vsyncpa [#allocation3 + $0x1], 0 }
   0x4   :  { %16 = vsyncpa [#allocation6], 0 }
   0x5   :  { %18 = vsyncpa [#allocation6 + $0x1], 0 }
   0x6   :  { %19 = vsyncpa [#allocation4], 0 }
   0x7   :  { %21 = vsyncpa [#allocation4 + $0x1], 0 }
   0x8   :  { %22 = vsyncpa [#allocation10], 0 }
   0x9   :  { %24 = vsyncpa [#allocation10 + $0x1], 0  ;;  %s1067_s24 = smov 0   ;;  %s1069_s25 = smov 0  }
   0xa   :  { %s1071_s26 = smov 0   ;;  %s1073_s27 = smov 0  }
   0xb LB: > { %1360 = sst [smem:[#allocation16_spill]] %s1011_s26  ;;  %s1088_s28 = sadd.s32 4294967295, %s1015_s27   ;;  %s1015_s27 = sphi %s1073_s27, %s1378_s27   ;;  %s1011_s26 = sphi %s1071_s26, %s1380_s26   ;;  %s1007_s25 = sphi %s1069_s25, %s1382_s25   ;;  %s1003_s24 = sphi %s1067_s24, %s1381_s24  }
   0xc   : > { %s648_s29 = sadd.s32 4294967294, %s1015_s27   ;;  %p50_p0 = scmp.ne.s32.totalorder %s1007_s25, %s1003_s24 }
   0xd   : > { %p1352_p1 = scmp.eq.s32.totalorder %s1088_s28, 0  ;;  %p190_p3 = scmp.eq.s32.totalorder %s648_s29, 1 }
   0xe   : > { %p649_p5 = scmp.ge.s32.totalorder %s1015_s27, 1  ;;  %p223_p7 = scmp.lt.s32.totalorder %s1015_s27, 3 }
   0xf   : > { %p1097_p4 = por %p1352_p1, %p50_p0  ;;  %p1102_p6 = por %p190_p3, %p50_p0 }
  0x10   : > { %p1107_p8 = pnand %p649_p5, %p223_p7  ;;  %s1017_s10 = smov [#allocation7]  }
  0x11   : > { %s1361_s30 = scalar_select %p1097_p4, 1, 0 }
  0x12   : > { %s1362_s8 = scalar_select %p1102_p6, 1, 0 }
  0x13   : > { %s1363_s9 = scalar_select %p1107_p8, 1, 0 }
  0x14   : > { %s241_s11 = sshll.u32 %s1017_s10, 4  ;;  %p759_p9 = pneg %p1107_p8  ;;  %s1111_s11 = int_to_ptr.vmem [resolvable:$true] %s241_s11 }
  0x15   : > { %s1123_s13 = sadd.s32 1, %s1015_s27   ;;  %s37_s14 = sadd.s32 1, %s1011_s26 }
  0x16   : > { %p1118_p11 = pnand %p759_p9, %p1352_p1  ;;  %1365 = sst [smem:[#allocation17_spill]] %s1123_s13 }
  0x17   : > { %s34_s15 = ssub.s32 %s1015_s27, %s1123_s13  ;;  %s1366_s4 = sld [smem:[#allocation19_spill]] }
  0x18   : > { %p823_p13 = pneg %p1118_p11 }
  0x1d   : > { %s821_s18 = scalar_lea.hbm %s1366_s4, 2048 }
  0x1e   : > { %p822_p12 = scmp.ne.s32.totalorder %s1366_s4, %s821_s18  ;;  %p828_p5 = scmp.lt.u32.totalorder %s821_s18, %s1366_s4 }
  0x20   : > { %p824_p0 = pnand %p823_p13, %p822_p12 }
  0x22   : > { %p825_p3 = pneg %p824_p0 }
  0x24   : > { %p830_p7 = pnand %p828_p5, %p825_p3 }
  0x26   : > { %833 = shalt.err (!%p830_p7)
}
  0x27   : > { %s834_s23 = scalar_lea.vmem %s1111_s11, 2048  ;;  %p842_p2 = scmp.lt.s32.totalorder %s1111_s11, %s1111_s11 }
  0x28   : > { %p835_p9 = scmp.ne.s32.totalorder %s1111_s11, %s834_s23  ;;  %p843_p6 = scmp.lt.s32.totalorder %s834_s23, %s834_s23 }
  0x2a   : > { %p837_p10 = pnand %p835_p9, %p823_p13  ;;  %p844_p4 = por %p843_p6, %p842_p2 }
  0x2c   : > { %p838_p1 = pneg %p837_p10 }
  0x2e   : > { %p845_p8 = pnand %p844_p4, %p838_p1 }
  0x30   : > { %848 = shalt.err (!%p845_p8)
}
  0x31   : > { %s1018_s29 = smov 128   ;;  %s1019_s10 = smov 8  }
  0x32   : > { %762 = dma.hbm_to_vmem [thread:$0]  (!%p1118_p11), %s1366_s4, 2048, %s1111_s11, [#allocation6], %s1018_s29, %s1018_s29, %s1019_s10  }
  0x33   : > { %p35_p2 = scmp.eq.s32.totalorder %s34_s15, 0  ;;  %p44_p1 = scmp.ne.s32.totalorder %s1011_s26, %s1007_s25 }
  0x34   : > { %p45_p4 = scmp.eq.s32.totalorder %s1015_s27, 0  ;;  %p778_p6 = scmp.lt.s32.totalorder %s1015_s27, 2 }
  0x35   : > { %s1154_s18 = scalar_select %p35_p2, %s1011_s26, %s37_s14  }
  0x36   : > { %p46_p8 = por %p45_p4, %p44_p1  ;;  %p1368_p10 = scmp.eq.s32.totalorder %s1088_s28, 1 }
  0x37   : > { %1367 = sst [smem:[#allocation18_spill]] %s1154_s18  ;;  %s258_s20 = sand.u32 1, %s1011_s26  }
  0x38   : > { %p1158_p12 = por %p1368_p10, %p44_p1  ;;  %s653_s21 = sshll.u32 %s1015_s27, 7 }
  0x39   : > { %s1164_s22 = sshll.u32 %s258_s20, 3  ;;  %s1169_s11 = scalar_lea.hbm %s1344_s0, %s653_s21 }
  0x3a   : > { %s1369_s19 = scalar_select %p1158_p12, 1, 0 }
  0x3b   : > { %s262_s14 = scalar_lea.vmem [#allocation2], %s1164_s22  ;;  %p1172_p11 = pnand %p778_p6, %p46_p8 }
  0x3c   : > { %s269_s15 = sshll.u32 %s262_s14, 4  ;;  %s1181_s17 = scalar_lea.hbm %s1345_s1, %s653_s21  ;;  %s1176_s15 = int_to_ptr.vmem [resolvable:$true] %s269_s15 }
  0x3d   : > { %s259_s12 = scalar_lea.sflag [#allocation3], %s258_s20  ;;  %s849_s23 = scalar_lea.hbm %s1169_s11, 128 }
  0x3e   : > { %p850_p13 = scmp.ne.s32.totalorder %s1169_s11, %s849_s23  ;;  %p851_p0 = pneg %p1172_p11 }
  0x3f   : > { %s854_s18 = scalar_lea.hbm %s1344_s0, 256  ;;  %p855_p7 = scmp.lt.u32.totalorder %s1169_s11, %s1344_s0 }
  0x40   : > { %p852_p3 = pnand %p851_p0, %p850_p13  ;;  %p856_p9 = scmp.lt.u32.totalorder %s854_s18, %s849_s23 }
  0x41   : > { %p858_p1 = scmp.lt.u32.totalorder %s849_s23, %s1169_s11 }
  0x42   : > { %p853_p5 = pneg %p852_p3  ;;  %p857_p2 = por %p856_p9, %p855_p7 }
  0x44   : > { %p859_p4 = por %p858_p1, %p857_p2 }
  0x46   : > { %p860_p6 = pnand %p859_p4, %p853_p5 }
  0x48   : > { %863 = shalt.err (!%p860_p6)
}
  0x49   : > { %s864_s20 = scalar_lea.vmem %s1176_s15, 128  ;;  %s1020_s4 = smov [#allocation2]  }
  0x4a   : > { %p865_p8 = scmp.ne.s32.totalorder %s1176_s15, %s864_s20  ;;  %s869_s21 = sshll.u32 %s1020_s4, 4  ;;  %s870_s21 = int_to_ptr.vmem [resolvable:$false] %s869_s21 }
  0x4b   : > { %s871_s26 = scalar_lea.vmem %s870_s21, 256  ;;  %p872_p3 = scmp.lt.s32.totalorder %s1176_s15, %s870_s21 }
  0x4c   : > { %p867_p10 = pnand %p865_p8, %p851_p0  ;;  %p873_p7 = scmp.lt.s32.totalorder %s871_s26, %s864_s20 }
  0x4e   : > { %p868_p13 = pneg %p867_p10  ;;  %p874_p9 = por %p873_p7, %p872_p3 }
  0x50   : > { %p875_p2 = pnand %p874_p9, %p868_p13 }
  0x52   : > { %878 = shalt.err (!%p875_p2)
}
  0x53   : > { %766 = dma.hbm_to_vmem [thread:$0]  (!%p1172_p11), %s1169_s11, 128, %s1176_s15, %s259_s12  }
  0x54   : > { %s276_s13 = sand.u32 1, %s1015_s27   ;;  %s280_s18 = scalar_lea.vmem [#allocation5], %s1164_s22 }
  0x55   : > { %s287_s10 = sshll.u32 %s280_s18, 4  ;;  %s277_s16 = scalar_lea.sflag [#allocation6], %s276_s13  ;;  %s288_s10 = int_to_ptr.vmem [resolvable:$true] %s287_s10 }
  0x56   : > { %s879_s23 = scalar_lea.hbm %s1181_s17, 128  ;;  %s884_s4 = scalar_lea.hbm %s1345_s1, 256 }
  0x57   : > { %p880_p5 = scmp.ne.s32.totalorder %s1181_s17, %s879_s23  ;;  %p885_p6 = scmp.lt.u32.totalorder %s1181_s17, %s1345_s1 }
  0x58   : > { %p886_p8 = scmp.lt.u32.totalorder %s884_s4, %s879_s23  ;;  %p888_p13 = scmp.lt.u32.totalorder %s879_s23, %s1181_s17 }
  0x59   : > { %p882_p1 = pnand %p880_p5, %p851_p0 }
  0x5a   : > { %p887_p10 = por %p886_p8, %p885_p6 }
  0x5b   : > { %p883_p4 = pneg %p882_p1 }
  0x5c   : > { %p889_p3 = por %p888_p13, %p887_p10 }
  0x5e   : > { %p890_p7 = pnand %p889_p3, %p883_p4 }
  0x60   : > { %893 = shalt.err (!%p890_p7)
}
  0x61   : > { %s894_s22 = scalar_lea.vmem %s288_s10, 128  ;;  %s1021_s11 = smov [#allocation5]  }
  0x62   : > { %p895_p9 = scmp.ne.s32.totalorder %s288_s10, %s894_s22  ;;  %s899_s15 = sshll.u32 %s1021_s11, 4  ;;  %s900_s15 = int_to_ptr.vmem [resolvable:$false] %s899_s15 }
  0x63   : > { %s901_s12 = scalar_lea.vmem %s900_s15, 256  ;;  %p902_p1 = scmp.lt.s32.totalorder %s288_s10, %s900_s15 }
  0x64   : > { %p897_p2 = pnand %p895_p9, %p851_p0  ;;  %p903_p12 = scmp.lt.s32.totalorder %s901_s12, %s894_s22 }
  0x66   : > { %p898_p5 = pneg %p897_p2  ;;  %p904_p6 = por %p903_p12, %p902_p1 }
  0x68   : > { %p905_p8 = pnand %p904_p6, %p898_p5 }
  0x6a   : > { %908 = shalt.err (!%p905_p8)
}
  0x6b   : > { %769 = dma.hbm_to_vmem [thread:$0]  (!%p1172_p11), %s1181_s17, 128, %s288_s10, %s277_s16  }
  0x6c   : > { %p1371_p4 = scmp.ne.s32.totalorder %s1363_s9, 0 }
  0x6d   : > { %s1232_s13 = sand.u32 (!%p1371_p4), 1, %s1007_s25   ;;  %p1372_p12 = scmp.ne.s32.totalorder (!%p1371_p4), %s1361_s30, 0 }
  0x6e   : > { %296 = sbr.rel (%p1371_p4) target bundleno = 666 (0x29a), region = 44  ;;  %s1235_s18 = sshll.u32 (!%p1371_p4), %s1232_s13, 3 }
  0x6f   : > { %s299_s23 = scalar_lea.sflag (!%p1371_p4), [#allocation3], %s1232_s13  ;;  %s302_s14 = scalar_lea.vmem (!%p1371_p4), [#allocation2], %s1235_s18 }
  0x75   : > { %982 = dma.done.wait (%p1372_p12), %s299_s23, 128  }
  0x76   : > { %984 = vsyncadd (%p1372_p12), %s299_s23, 4294967168  ;;  %s307_s9 = sand.u32 1, %s1088_s28   ;;  %s311_s17 = scalar_lea.vmem [#allocation5], %s1235_s18 }
  0x77   : > { %s308_s29 = scalar_lea.sflag [#allocation6], %s307_s9 }
  0x78   : > { %986 = dma.done.wait (%p1372_p12), %s308_s29, 128  }
  0x79   : > { %988 = vsyncadd (%p1372_p12), %s308_s29, 4294967168  ;;  %p1373_p11 = scmp.eq.s32.totalorder %s1088_s28, 0 }
  0x7b   : > { %990 = dma.done.wait (%p1373_p11), [#allocation6], 2048   ;;  %p1374_p0 = pmov %p1373_p11 }
  0x7c   : > { %v356_v0 = vld [vmem:[%s302_s14] sm:$0xff]  ;;  %v357_v1 = vld [vmem:[%s311_s17] sm:$0xff]  ;;  %v1022_v6 = vmov 0.0|0.0   ;;  %vm1023_vm0 = vmmov 0   ;;  %v1024_v25 = vmov 0.0   ;;  %s667_s4 = sshll.u32 %s1088_s28, 7 }
  0x7d   : > { %992 = vsyncadd (%p1374_p0), [#allocation6], 4294965248  ;;  %v1253_v2 = vadd.f32 %v357_v1, %v356_v0  ;;  %v388_v3 = vld [vmem:[#allocation7] sm:$0xff]  ;;  %v389_v4 = vld [vmem:[#allocation7 + $0x8] sm:$0xff]  ;;  %723 = vmatprep.subr.bf16.mxu0 %v1022_v6  ;;  %720 = vmatprep.mubr.msk.f32.mxu0 %vm1023_vm0, %v1024_v25  ;;  %s355_s21 = scalar_lea.vmem [#allocation9], %s1235_s18  ;;  %s1271_s11 = scalar_lea.hbm %s1351_s7, %s667_s4 }
  0x7e   : > { %v390_v5 = vld [vmem:[#allocation7 + $0x10] sm:$0xff]  ;;  %v724_v7 = vpack.c.bf16 %v389_v4, %v388_v3  ;;  %v391_v8 = vld [vmem:[#allocation7 + $0x18] sm:$0xff]  ;;  %v392_v10 = vld [vmem:[#allocation7 + $0x20] sm:$0xff]  ;;  %s514_s15 = sshll.u32 %s355_s21, 4  ;;  %s488_s12 = scalar_lea.sflag [#allocation10], %s1232_s13  ;;  %s515_s15 = int_to_ptr.vmem [resolvable:$true] %s514_s15 }
  0x7f   : > { %360 = vadd.xlane.f32.xlu0 %v1253_v2  ;;  %v727_v9 = vpack.c.bf16 %v391_v8, %v390_v5  ;;  %v393_v11 = vld [vmem:[#allocation7 + $0x28] sm:$0xff]  ;;  %v394_v17 = vld [vmem:[#allocation7 + $0x30] sm:$0xff]  ;;  %v395_v18 = vld [vmem:[#allocation7 + $0x38] sm:$0xff]  ;;  %359 = vst [vmem:[%s355_s21] sm:$0xff] %v1253_v2  ;;  %s909_s23 = scalar_lea.vmem %s515_s15, 128  ;;  %p1375_p13 = scmp.ne.s32.totalorder %s1369_s19, 0 }
  0x80   : > { %725 = vmatpush3.bf16.msra.mxu0 %v724_v7  ;;  %v730_v12 = vpack.c.bf16 %v393_v11, %v392_v10  ;;  %v733_v19 = vpack.c.bf16 %v395_v18, %v394_v17  ;;  %v396_v20 = vld [vmem:[#allocation7 + $0x40] sm:$0xff]  ;;  %v397_v21 = vld [vmem:[#allocation7 + $0x48] sm:$0xff]  ;;  %v398_v23 = vld [vmem:[#allocation7 + $0x50] sm:$0xff]  ;;  %p910_p10 = scmp.ne.s32.totalorder %s515_s15, %s909_s23  ;;  %s1025_s14 = smov [#allocation9]  }
  0x81   : > { %726 = vmatprep.subr.bf16.mxu0 %v1022_v6  ;;  %v736_v22 = vpack.c.bf16 %v397_v21, %v396_v20  ;;  %v399_v24 = vld [vmem:[#allocation7 + $0x58] sm:$0xff]  ;;  %v400_v27 = vld [vmem:[#allocation7 + $0x60] sm:$0xff]  ;;  %v401_v28 = vld [vmem:[#allocation7 + $0x68] sm:$0xff]  ;;  %s913_s9 = sshll.u32 %s1025_s14, 4  ;;  %s914_s9 = int_to_ptr.vmem [resolvable:$false] %s913_s9 }
  0x82   : > { %v739_v26 = vpack.c.bf16 %v399_v24, %v398_v23  ;;  %v742_v29 = vpack.c.bf16 %v401_v28, %v400_v27  ;;  %v402_v30 = vld [vmem:[#allocation7 + $0x70] sm:$0xff]  ;;  %v403_v31 = vld [vmem:[#allocation7 + $0x78] sm:$0xff]  ;;  %v662_v37 = vld [vmem:[%s1346_s2] ss:$0 sm:$0xff]  ;;  %p911_p3 = pnand %p910_p10, %p1375_p13  ;;  %s915_s29 = scalar_lea.vmem %s914_s9, 256 }
  0x83   : > { %v745_v32 = vpack.c.bf16 %v403_v31, %v402_v30  ;;  %v663_v39 = vld [vmem:[%s1347_s3] ss:$0 sm:$0xff]  ;;  %p916_p9 = scmp.lt.s32.totalorder %s515_s15, %s914_s9  ;;  %p917_p2 = scmp.lt.s32.totalorder %s915_s29, %s909_s23 }
  0x84   : > { %728 = vmatpush3.bf16.msra.mxu0 %v727_v9  ;;  %p912_p7 = pneg %p911_p3 }
  0x85   : > { %729 = vmatprep.subr.bf16.mxu0 %v1022_v6  ;;  %p918_p5 = por %p917_p2, %p916_p9 }
  0x87   : > { %p919_p1 = pnand %p918_p5, %p912_p7 }
  0x88   : > { %731 = vmatpush3.bf16.msra.mxu0 %v730_v12 }
  0x89   : > { %732 = vmatprep.subr.bf16.mxu0 %v1022_v6 }
  0x8c   : > { %734 = vmatpush3.bf16.msra.mxu0 %v733_v19 }
  0x8d   : > { %735 = vmatprep.subr.bf16.mxu0 %v1022_v6 }
  0x90   : > { %737 = vmatpush3.bf16.msra.mxu0 %v736_v22 }
  0x91   : > { %738 = vmatprep.subr.bf16.mxu0 %v1022_v6 }
  0x94   : > { %740 = vmatpush3.bf16.msra.mxu0 %v739_v26 }
  0x95   : > { %741 = vmatprep.subr.bf16.mxu0 %v1022_v6 }
  0x98   : > { %743 = vmatpush3.bf16.msra.mxu0 %v742_v29 }
  0x99   : > { %744 = vmatprep.subr.bf16.mxu0 %v1022_v6 }
  0x9c   : > { %746 = vmatpush3.bf16.msra.mxu0 %v745_v32 }
 0x10c   : > { %v361_v13 = vpop.xlane.xlu0 %360 }
 0x10d   : > { %v363_v14 = vmul.f32 0.0078125, %v361_v13 }
 0x10f   : > { %v364_v15 = vsub.f32 %v1253_v2, %v363_v14 }
 0x111   : > { %v365_v16 = vmul.f32 %v364_v15, %v364_v15 }
 0x113   : > { %366 = vadd.xlane.f32.xlu0 %v365_v16 }
 0x1a0   : > { %v367_v33 = vpop.xlane.xlu0 %366 }
 0x1a1   : > { %v368_v34 = vmul.f32 0.0078125, %v367_v33 }
 0x1a3   : > { %v369_v35 = vadd.f32 1e-05, %v368_v34 }
 0x1a5   : > { %819 = vrsqrt.f32 %v369_v35 }
 0x1af   : > { %v820_v36 = vpop.eup %819 }
 0x1b0   : > { %v371_v38 = vmul.f32 %v820_v36, %v364_v15 }
 0x1b2   : > { %v379_v40 = vmul.f32 %v662_v37, %v371_v38 }
 0x1b4   : > { %v387_v41 = vadd.f32 %v663_v39, %v379_v40 }
 0x1b6   : > { %721 = vmatmul.mubr.f32.vlgmr.msra.gmra.mrb[0].mxu0 %v387_v41 }
 0x1b7   : > { %922 = shalt.err (!%p919_p1)
}
 0x1b8   : > { %s923_s17 = scalar_lea.hbm %s1271_s11, 128  ;;  %s927_s16 = scalar_lea.hbm %s1351_s7, 256 }
 0x1b9   : > { %p924_p6 = scmp.ne.s32.totalorder %s1271_s11, %s923_s17  ;;  %p928_p12 = scmp.lt.u32.totalorder %s1271_s11, %s1351_s7 }
 0x1ba   : > { %p929_p11 = scmp.lt.u32.totalorder %s927_s16, %s923_s17  ;;  %p931_p10 = scmp.lt.u32.totalorder %s923_s17, %s1271_s11 }
 0x1bb   : > { %p925_p8 = pnand %p924_p6, %p1375_p13 }
 0x1bc   : > { %p930_p0 = por %p929_p11, %p928_p12 }
 0x1bd   : > { %p926_p4 = pneg %p925_p8 }
 0x1be   : > { %p932_p3 = por %p931_p10, %p930_p0 }
 0x1c0   : > { %p933_p7 = pnand %p932_p3, %p926_p4 }
 0x1c2   : > { %936 = shalt.err (!%p933_p7)
}
 0x1c3   : > { %756 = dma.vmem_to_hbm [thread:$0]  (%p1375_p13), %s515_s15, 128, %s1271_s11, %s488_s12   ;;  %v664_v42 = vld [vmem:[%s1349_s5] ss:$0 sm:$0xff] }
 0x1c4   : > { %s348_s23 = scalar_lea.vmem [#allocation8], %s1235_s18  ;;  %s1300_s17 = scalar_lea.hbm %s1350_s6, %s667_s4 }
 0x1c5   : > { %s501_s14 = sshll.u32 %s348_s23, 4  ;;  %s483_s11 = scalar_lea.sflag [#allocation4], %s1232_s13  ;;  %s1302_s14 = int_to_ptr.vmem [resolvable:$true] %s501_s14 }
 0x1c6   : > { %s937_s15 = scalar_lea.vmem %s1302_s14, 128  ;;  %s1026_s18 = smov [#allocation8]  }
 0x1c7   : > { %p938_p9 = scmp.ne.s32.totalorder %s1302_s14, %s937_s15  ;;  %s941_s12 = sshll.u32 %s1026_s18, 4  ;;  %s942_s12 = int_to_ptr.vmem [resolvable:$false] %s941_s12 }
 0x1c8   : > { %s943_s28 = scalar_lea.vmem %s942_s12, 256  ;;  %p944_p1 = scmp.lt.s32.totalorder %s1302_s14, %s942_s12 }
 0x1c9   : > { %p939_p2 = pnand %p938_p9, %p1375_p13  ;;  %p945_p6 = scmp.lt.s32.totalorder %s943_s28, %s937_s15 }
 0x1cb   : > { %p940_p5 = pneg %p939_p2  ;;  %p946_p8 = por %p945_p6, %p944_p1 }
 0x1cd   : > { %p947_p4 = pnand %p946_p8, %p940_p5 }
 0x289   : > { %v477_v43 = vpop.f32.mrb[0].mxu0 }
 0x28a   : > { %v478_v44 = vadd.f32 %v664_v42, %v477_v43  ;;  %v722_v45 = vpop.f32.mrb[1].mxu0 }
 0x28c   : > { %481 = vst [vmem:[%s348_s23] sm:$0xff] %v478_v44 }
 0x28d   : > { %950 = shalt.err (!%p947_p4)
}
 0x28e   : > { %s951_s13 = scalar_lea.hbm %s1300_s17, 128  ;;  %s955_s10 = scalar_lea.hbm %s1350_s6, 256 }
 0x28f   : > { %p952_p12 = scmp.ne.s32.totalorder %s1300_s17, %s951_s13  ;;  %p956_p10 = scmp.lt.u32.totalorder %s1300_s17, %s1350_s6 }
 0x290   : > { %p957_p3 = scmp.lt.u32.totalorder %s955_s10, %s951_s13  ;;  %p959_p9 = scmp.lt.u32.totalorder %s951_s13, %s1300_s17 }
 0x291   : > { %p953_p11 = pnand %p952_p12, %p1375_p13 }
 0x292   : > { %p958_p7 = por %p957_p3, %p956_p10 }
 0x293   : > { %p954_p0 = pneg %p953_p11 }
 0x294   : > { %p960_p2 = por %p959_p9, %p958_p7 }
 0x296   : > { %p961_p5 = pnand %p960_p2, %p954_p0 }
 0x298   : > { %964 = shalt.err (!%p961_p5)
}
 0x299   : > { %755 = dma.vmem_to_hbm [thread:$0]  (%p1375_p13), %s1302_s14, 128, %s1300_s17, %s483_s11  }
 0x29a PF: > { %s526_s21 = sand.u32 1, %s1003_s24   ;;  %p1376_p1 = scmp.ne.s32.totalorder %s1362_s8, 0 }
 0x29b   : > { %p1377_p6 = scmp.ge.s32.totalorder %s1015_s27, 2  ;;  %s527_s26 = scalar_lea.sflag [#allocation4], %s526_s21 }
 0x29d   : > { %p771_p8 = pnand %p1377_p6, %p1376_p1 }
 0x29f   : > { %994 = dma.done.wait (!%p771_p8), %s527_s26, 128  }
 0x2a0   : > { %996 = vsyncadd (!%p771_p8), %s527_s26, 4294967168  ;;  %s536_s22 = scalar_lea.sflag [#allocation10], %s526_s21 }
 0x2a1   : > { %998 = dma.done.wait (!%p771_p8), %s536_s22, 128  }
 0x2a2   : > { %1000 = vsyncadd (!%p771_p8), %s536_s22, 4294967168  ;;  %s1378_s27 = sld [smem:[#allocation17_spill]]  ;;  %s1379_s19 = sld [smem:[#allocation16_spill]] }
 0x2a3   : > { %s1380_s26 = sld [smem:[#allocation18_spill]]  ;;  %s1381_s24 = smov %s1007_s25 }
 0x2a8   : > { %p27_p13 = scmp.ge.s32.totalorder %s1378_s27, 4   ;;  %s1382_s25 = smov %s1379_s19 }
 0x2aa   :  { %29 = sbr.rel (!%p27_p13) target bundleno = 11 (0xb), region = 123 }
 0x2b1   :  { %541 = vsyncpa [#allocation3], 1 }
 0x2b2   :  { %543 = vsyncpa [#allocation3 + $0x1], 1 }
 0x2b3   :  { %544 = vsyncpa [#allocation6], 1 }
 0x2b4   :  { %546 = vsyncpa [#allocation6 + $0x1], 1 }
 0x2b5   :  { %547 = vsyncpa [#allocation4], 1 }
 0x2b6   :  { %549 = vsyncpa [#allocation4 + $0x1], 1 }
 0x2b7   :  { %550 = vsyncpa [#allocation10], 1 }
 0x2b8   :  { %552 = vsyncpa [#allocation10 + $0x1], 1 }

</bundles_post_ra>
